<compile_context>
chip_gen: v5e
topology: v5e:2x2
jax: 0.10.0
libtpu: 0.0.40
codegen_flags: <defaults>
</compile_context>

<pallas_src>
import jax
import jax.numpy as jnp
from jax import lax
from jax.experimental import pallas as pl
from jax.experimental.pallas import tpu as pltpu


def _make_encoder_kernel(num_heads, has_bias):
    """Fused per-(batch, layer) encoder-layer kernel.

    has_bias: static bool -- whether an additive attention-logit bias input
              (mask and/or DistMatrix) is passed.
    """

    def kernel(*refs):
        idx = 0
        x_ref = refs[idx]; idx += 1
        bias_ref = None
        if has_bias:
            bias_ref = refs[idx]; idx += 1
        (wqkv_ref, bqkv_ref, wo_ref, bo_ref,
         ln1w_ref, ln1b_ref, w1_ref, b1_ref,
         w2_ref, b2_ref, ln2w_ref, ln2b_ref) = refs[idx:idx + 12]
        out_ref = refs[idx + 12]
        attn_ref = refs[idx + 13]

        H = num_heads
        l = pl.program_id(1)

        # Residual stream is carried in the output block (its index_map is
        # constant along the layer axis, so the block stays VMEM-resident).
        @pl.when(l == 0)
        def _():
            out_ref[0] = x_ref[0]

        x = out_ref[0].astype(jnp.float32)            # [S, D] residual stream
        S, D = x.shape
        dk = D // H
        cdt = wqkv_ref.dtype                          # GEMM compute dtype (bf16)
        xb = x.astype(cdt)

        # ---- fused QKV projection (one GEMM, K = D), transposed layout -------
        # wqkv is [3D, D] row-major ("out, in"); 1/sqrt(dk) already folded into
        # the W_q / b_q rows wrapper-side.
        qkv_t = lax.dot_general(wqkv_ref[0], xb, (((1,), (1,)), ((), ())),
                                preferred_element_type=jnp.float32)   # [3D, S]
        qkv_t = qkv_t + bqkv_ref[0]                                    # [3D, 1] bcast
        # Split heads on the sublane-major axis (no lane slicing / transposes).
        qkv_h = qkv_t.reshape(3 * H, dk, S)
        qh = qkv_h[:H].astype(cdt)                                     # [H, dk, S]
        kh = qkv_h[H:2 * H].astype(cdt)
        vh = qkv_h[2 * H:].astype(cdt)

        # ---- head-batched attention scores: scores[h,q,k] = sum_e q[h,e,q]k[h,e,k]
        scores = lax.dot_general(qh, kh, (((1,), (1,)), ((0,), (0,))),
                                 preferred_element_type=jnp.float32)  # [H, S, S]
        if has_bias:
            # TODO(synk): mask convention (1=keep -> additive -1e9) and DistMatrix
            # being added after the 1/sqrt(dk) scaling are assumptions.
            scores = scores + bias_ref[0][None, :, :]

        # ---- softmax in f32 (exact reciprocal on the tiny [H,S,1] denominator)
        m = jnp.max(scores, axis=-1, keepdims=True)
        e = jnp.exp(scores - m)
        denom = jnp.sum(e, axis=-1, keepdims=True)
        p = e * pl.reciprocal(denom, approx=False)                     # [H, S, S]
        attn_ref[0, 0] = p.astype(attn_ref.dtype)

        # ---- context (head-major) + fused output projection (one GEMM, K = D) -
        # ctx_t[h,e,q] = sum_k v[h,e,k] * p[h,q,k]
        ctx_t = lax.dot_general(vh, p.astype(cdt), (((2,), (2,)), ((0,), (0,))),
                                preferred_element_type=jnp.float32)   # [H, dk, S]
        ctx2 = ctx_t.reshape(D, S).astype(cdt)        # merge heads on major axes
        attn_out = lax.dot_general(ctx2, wo_ref[0], (((0,), (0,)), ((), ())),
                                   preferred_element_type=jnp.float32)
        attn_out = attn_out + bo_ref[0]                                # [S, D]

        # ---- sublayer 1: residual + LayerNorm (f32) ---------------------------
        y = x + attn_out
        mu = jnp.mean(y, axis=-1, keepdims=True)
        var = jnp.mean((y - mu) ** 2, axis=-1, keepdims=True)
        y = (y - mu) * lax.rsqrt(var + 1e-5) * ln1w_ref[0] + ln1b_ref[0]

        # ---- position-wise feed-forward ---------------------------------------
        # TODO(synk): tile over D_ff with an f32 VMEM accumulator at production Dff.
        h1 = jnp.dot(y.astype(cdt), w1_ref[0],
                     preferred_element_type=jnp.float32) + b1_ref[0]
        h1 = jnp.maximum(h1, 0.0)
        ff = jnp.dot(h1.astype(cdt), w2_ref[0],
                     preferred_element_type=jnp.float32) + b2_ref[0]

        # ---- sublayer 2: residual + LayerNorm (f32) ---------------------------
        z = y + ff
        mu2 = jnp.mean(z, axis=-1, keepdims=True)
        var2 = jnp.mean((z - mu2) ** 2, axis=-1, keepdims=True)
        out_ref[0] = ((z - mu2) * lax.rsqrt(var2 + 1e-5)
                      * ln2w_ref[0] + ln2b_ref[0]).astype(out_ref.dtype)

    return kernel


def encoder_forward(x, layer_params, num_heads, mask=None, dist_matrix=None,
                    compute_dtype=jnp.bfloat16, attn_dtype=jnp.bfloat16):
    """Matches Encoder.forward: DistMatrix applied only to layer 0.

    x:           [B, S, D] float32
    mask:        optional [S, S] (batch-invariant), 1=keep / 0=drop
                 # TODO(synk): per-batch masks not supported in this fused kernel.
    dist_matrix: optional [S, S] additive attention-logit bias for layer 0.
    """
    B, S, D = x.shape
    L = len(layer_params)
    H = num_heads
    dk = D // H
    f32 = jnp.float32
    x = x.astype(f32)

    stk = lambda name: jnp.stack([jnp.asarray(p[name], f32) for p in layer_params], 0)

    # ---- fused QKV weight, row-major [L, 3D, D]; scale folded into Q rows ----
    scale = 1.0 / float(dk) ** 0.5
    wq_t = jnp.swapaxes(stk("wq"), 1, 2) * scale
    wk_t = jnp.swapaxes(stk("wk"), 1, 2)
    wv_t = jnp.swapaxes(stk("wv"), 1, 2)
    wqkv = jnp.concatenate([wq_t, wk_t, wv_t], axis=1).astype(compute_dtype)
    bqkv = jnp.swapaxes(
        jnp.concatenate([stk("bq") * scale, stk("bk"), stk("bv")], axis=2), 1, 2)  # [L,3D,1]

    wo = stk("wo").astype(compute_dtype)          # [L, D, D]  ("in, out")
    bo = stk("bo")                                # [L, 1, D]
    w1 = stk("w1").astype(compute_dtype)          # [L, D, Dff]
    b1 = stk("b1")                                # [L, 1, Dff]
    w2 = stk("w2").astype(compute_dtype)          # [L, Dff, D]
    b2 = stk("b2")                                # [L, 1, D]
    ln1w, ln1b = stk("ln1_w"), stk("ln1_b")
    ln2w, ln2b = stk("ln2_w"), stk("ln2_b")

    weights = [wqkv, bqkv, wo, bo, ln1w, ln1b, w1, b1, w2, b2, ln2w, ln2b]

    inputs = [x]
    in_specs = [pl.BlockSpec((1, S, D), lambda b, l: (b, 0, 0))]

    # Two bias planes only: plane 0 = layer-0 bias (mask + DistMatrix),
    # plane 1 = mask-only bias for all later layers.  Selected via index_map.
    has_bias = (mask is not None) or (dist_matrix is not None)
    if has_bias:
        mb = jnp.zeros((S, S), f32)
        if mask is not None:
            mb = (1.0 - jnp.asarray(mask, f32).reshape(S, S)) * (-1e9)
        l0 = mb
        if dist_matrix is not None:
            l0 = l0 + jnp.asarray(dist_matrix, f32).reshape(S, S)
        bias = jnp.stack([l0, mb], axis=0)        # [2, S, S]
        inputs.append(bias)
        in_specs.append(
            pl.BlockSpec((1, S, S), lambda b, l: (jnp.minimum(l, 1), 0, 0)))

    # Per-layer weight blocks: streamed along the (arbitrary) layer grid axis,
    # so only one layer's weights are VMEM-resident and the next layer's DMA is
    # pipelined under the current layer's compute.
    def layer_spec(arr):
        return pl.BlockSpec((1,) + arr.shape[1:],
                            lambda b, l: (l,) + (0,) * (arr.ndim - 1))

    inputs += weights
    in_specs += [layer_spec(w) for w in weights]

    out_specs = (
        pl.BlockSpec((1, S, D), lambda b, l: (b, 0, 0)),          # layer-invariant carry
        pl.BlockSpec((1, 1, H, S, S), lambda b, l: (b, l, 0, 0, 0)),  # per-layer block
    )
    out_shape = (
        jax.ShapeDtypeStruct((B, S, D), f32),
        jax.ShapeDtypeStruct((B, L, H, S, S), attn_dtype),
    )

    kernel = _make_encoder_kernel(H, has_bias)
    out, attn = pl.pallas_call(
        kernel,
        grid=(B, L),
        in_specs=in_specs,
        out_specs=out_specs,
        out_shape=out_shape,
        compiler_params=pltpu.CompilerParams(
            dimension_semantics=("parallel", "arbitrary"),
            vmem_limit_bytes=48 * 1024 * 1024),
    )(*inputs)

    attention_weights = {"encoder_layer{}".format(l + 1): attn[:, l] for l in range(L)}
    return out, attention_weights


def init_layer_params(key, d_model, d_ff):
    ks = jax.random.split(key, 6)
    s_d = 1.0 / (d_model ** 0.5)
    s_f = 1.0 / (d_ff ** 0.5)
    f32 = jnp.float32
    return {
        "wq": jax.random.normal(ks[0], (d_model, d_model), f32) * s_d,
        "bq": jnp.zeros((1, d_model), f32),
        "wk": jax.random.normal(ks[1], (d_model, d_model), f32) * s_d,
        "bk": jnp.zeros((1, d_model), f32),
        "wv": jax.random.normal(ks[2], (d_model, d_model), f32) * s_d,
        "bv": jnp.zeros((1, d_model), f32),
        "wo": jax.random.normal(ks[3], (d_model, d_model), f32) * s_d,
        "bo": jnp.zeros((1, d_model), f32),
        "ln1_w": jnp.ones((1, d_model), f32),
        "ln1_b": jnp.zeros((1, d_model), f32),
        "w1": jax.random.normal(ks[4], (d_model, d_ff), f32) * s_d,
        "b1": jnp.zeros((1, d_ff), f32),
        "w2": jax.random.normal(ks[5], (d_ff, d_model), f32) * s_f,
        "b2": jnp.zeros((1, d_model), f32),
        "ln2_w": jnp.ones((1, d_model), f32),
        "ln2_b": jnp.zeros((1, d_model), f32),
    }


if __name__ == "__main__":
    # Small config: d_model=32, num_layers=2, num_heads=4, d_ff=64
    B, S, D, H, DFF, L = 2, 8, 32, 4, 64, 2

    key = jax.random.PRNGKey(0)
    kx, kd, kp = jax.random.split(key, 3)

    x = jax.random.normal(kx, (B, S, D), jnp.float32)
    dist_matrix = jax.random.normal(kd, (S, S), jnp.float32) * 0.1

    layer_keys = jax.random.split(kp, L)
    layer_params = [init_layer_params(layer_keys[i], D, DFF) for i in range(L)]

    out, attn_weights = encoder_forward(x, layer_params, H,
                                        mask=None, dist_matrix=dist_matrix)
    jax.block_until_ready(out)
    for v in attn_weights.values():
        jax.block_until_ready(v)

    assert out.shape == (B, S, D)
    assert attn_weights["encoder_layer1"].shape == (B, H, S, S)
    assert attn_weights["encoder_layer2"].shape == (B, H, S, S)
    print("KERNEL_OK")
</pallas_src>

<mosaic_0001>
module attributes {stable_mosaic.version = 11 : i64} {
  func.func @kernel(%arg0: i32, %arg1: i32, %arg2: memref<1x8x32xf32, #tpu.memory_space<vmem>>, %arg3: memref<1x8x8xf32, #tpu.memory_space<vmem>>, %arg4: memref<1x96x32xbf16, #tpu.memory_space<vmem>>, %arg5: memref<1x96x1xf32, #tpu.memory_space<vmem>>, %arg6: memref<1x32x32xbf16, #tpu.memory_space<vmem>>, %arg7: memref<1x1x32xf32, #tpu.memory_space<vmem>>, %arg8: memref<1x1x32xf32, #tpu.memory_space<vmem>>, %arg9: memref<1x1x32xf32, #tpu.memory_space<vmem>>, %arg10: memref<1x32x64xbf16, #tpu.memory_space<vmem>>, %arg11: memref<1x1x64xf32, #tpu.memory_space<vmem>>, %arg12: memref<1x64x32xbf16, #tpu.memory_space<vmem>>, %arg13: memref<1x1x32xf32, #tpu.memory_space<vmem>>, %arg14: memref<1x1x32xf32, #tpu.memory_space<vmem>>, %arg15: memref<1x1x32xf32, #tpu.memory_space<vmem>>, %arg16: memref<1x8x32xf32, #tpu.memory_space<vmem>>, %arg17: memref<1x1x4x8x8xbf16, #tpu.memory_space<vmem>>) attributes {dimension_semantics = [#tpu.dimension_semantics<parallel>, #tpu.dimension_semantics<arbitrary>], iteration_bounds = array<i64: 2, 2>, scalar_prefetch = 0 : i64, scratch_operands = 0 : i64, tpu.core_type = #tpu.core_type<tc>, window_params = [{transform_indices = @transform_0, window_bounds = array<i64: 1, 8, 32>}, {transform_indices = @transform_1, window_bounds = array<i64: 1, 8, 8>}, {transform_indices = @transform_2, window_bounds = array<i64: 1, 96, 32>}, {transform_indices = @transform_3, window_bounds = array<i64: 1, 96, 1>}, {transform_indices = @transform_4, window_bounds = array<i64: 1, 32, 32>}, {transform_indices = @transform_5, window_bounds = array<i64: 1, 1, 32>}, {transform_indices = @transform_6, window_bounds = array<i64: 1, 1, 32>}, {transform_indices = @transform_7, window_bounds = array<i64: 1, 1, 32>}, {transform_indices = @transform_8, window_bounds = array<i64: 1, 32, 64>}, {transform_indices = @transform_9, window_bounds = array<i64: 1, 1, 64>}, {transform_indices = @transform_10, window_bounds = array<i64: 1, 64, 32>}, {transform_indices = @transform_11, window_bounds = array<i64: 1, 1, 32>}, {transform_indices = @transform_12, window_bounds = array<i64: 1, 1, 32>}, {transform_indices = @transform_13, window_bounds = array<i64: 1, 1, 32>}, {transform_indices = @transform_14, window_bounds = array<i64: 1, 8, 32>}, {transform_indices = @transform_15, window_bounds = array<i64: 1, 1, 4, 8, 8>}]} {
    %c0_i32 = arith.constant 0 : i32
    %0 = arith.cmpi eq, %arg1, %c0_i32 : i32
    %1 = arith.extui %0 : i1 to i32
    %c0_i32_0 = arith.constant 0 : i32
    %2 = arith.cmpi ne, %1, %c0_i32_0 : i32
    scf.if %2 {
      %c0_68 = arith.constant 0 : index
      %c0_69 = arith.constant 0 : index
      %c0_70 = arith.constant 0 : index
      %126 = vector.load %arg2[%c0_68, %c0_69, %c0_70] : memref<1x8x32xf32, #tpu.memory_space<vmem>>, vector<1x8x32xf32>
      %127 = vector.shape_cast %126 : vector<1x8x32xf32> to vector<8x32xf32>
      %c0_71 = arith.constant 0 : index
      %c0_72 = arith.constant 0 : index
      %c0_73 = arith.constant 0 : index
      %128 = vector.load %arg16[%c0_71, %c0_72, %c0_73] : memref<1x8x32xf32, #tpu.memory_space<vmem>>, vector<1x8x32xf32>
      %129 = vector.shape_cast %128 : vector<1x8x32xf32> to vector<8x32xf32>
      %130 = vector.shape_cast %127 : vector<8x32xf32> to vector<1x8x32xf32>
      tpu.vector_store %arg16[%c0_71, %c0_72, %c0_73], %130 {strides = array<i32>} : memref<1x8x32xf32, #tpu.memory_space<vmem>>, vector<1x8x32xf32>,
    } else {
    }
    %c0 = arith.constant 0 : index
    %c0_1 = arith.constant 0 : index
    %c0_2 = arith.constant 0 : index
    %3 = vector.load %arg16[%c0, %c0_1, %c0_2] : memref<1x8x32xf32, #tpu.memory_space<vmem>>, vector<1x8x32xf32>
    %4 = vector.shape_cast %3 : vector<1x8x32xf32> to vector<8x32xf32>
    %5 = arith.truncf %4 : vector<8x32xf32> to vector<8x32xbf16>
    %c0_3 = arith.constant 0 : index
    %c0_4 = arith.constant 0 : index
    %c0_5 = arith.constant 0 : index
    %6 = vector.load %arg4[%c0_3, %c0_4, %c0_5] : memref<1x96x32xbf16, #tpu.memory_space<vmem>>, vector<1x96x32xbf16>
    %7 = vector.shape_cast %6 : vector<1x96x32xbf16> to vector<96x32xbf16>
    %cst = arith.constant dense<0.000000e+00> : vector<96x8xf32>
    %8 = tpu.matmul %7, %5, %cst {dimension_numbers = #tpu.dot_dimension_numbers<[1], [1], [0], [0], [0, 0, 1, 0], [], []>} : vector<96x32xbf16>, vector<8x32xbf16>, vector<96x8xf32> -> vector<96x8xf32>
    %c0_6 = arith.constant 0 : index
    %c0_7 = arith.constant 0 : index
    %c0_8 = arith.constant 0 : index
    %9 = vector.load %arg5[%c0_6, %c0_7, %c0_8] : memref<1x96x1xf32, #tpu.memory_space<vmem>>, vector<1x96x1xf32>
    %10 = vector.shape_cast %9 : vector<1x96x1xf32> to vector<96x1xf32>
    %11 = vector.broadcast %10 : vector<96x1xf32> to vector<96x8xf32>
    %12 = arith.addf %8, %11 : vector<96x8xf32>
    %13 = vector.shape_cast %12 : vector<96x8xf32> to vector<12x8x8xf32>
    %14 = vector.extract_strided_slice %13 {offsets = [0, 0, 0], sizes = [4, 8, 8], strides = [1, 1, 1]} : vector<12x8x8xf32> to vector<4x8x8xf32>
    %15 = arith.truncf %14 : vector<4x8x8xf32> to vector<4x8x8xbf16>
    %16 = vector.extract_strided_slice %13 {offsets = [4, 0, 0], sizes = [4, 8, 8], strides = [1, 1, 1]} : vector<12x8x8xf32> to vector<4x8x8xf32>
    %17 = arith.truncf %16 : vector<4x8x8xf32> to vector<4x8x8xbf16>
    %18 = vector.extract_strided_slice %13 {offsets = [8, 0, 0], sizes = [4, 8, 8], strides = [1, 1, 1]} : vector<12x8x8xf32> to vector<4x8x8xf32>
    %19 = arith.truncf %18 : vector<4x8x8xf32> to vector<4x8x8xbf16>
    %cst_9 = arith.constant dense<0.000000e+00> : vector<4x8x8xf32>
    %20 = tpu.matmul %15, %17, %cst_9 {dimension_numbers = #tpu.dot_dimension_numbers<[1], [1], [2], [2], [0, 0, 0, 2, 1, 2], [0], [0]>} : vector<4x8x8xbf16>, vector<4x8x8xbf16>, vector<4x8x8xf32> -> vector<4x8x8xf32>
    %c0_10 = arith.constant 0 : index
    %c0_11 = arith.constant 0 : index
    %c0_12 = arith.constant 0 : index
    %21 = vector.load %arg3[%c0_10, %c0_11, %c0_12] : memref<1x8x8xf32, #tpu.memory_space<vmem>>, vector<1x8x8xf32>
    %22 = vector.shape_cast %21 : vector<1x8x8xf32> to vector<8x8xf32>
    %23 = vector.shape_cast %22 : vector<8x8xf32> to vector<1x8x8xf32>
    %24 = vector.broadcast %23 : vector<1x8x8xf32> to vector<4x8x8xf32>
    %25 = arith.addf %20, %24 : vector<4x8x8xf32>
    %cst_13 = arith.constant dense<0xFF800000> : vector<4x8xf32>
    %26 = vector.multi_reduction <maximumf>, %25, %cst_13 [2] : vector<4x8x8xf32> to vector<4x8xf32>
    %27 = vector.shape_cast %26 : vector<4x8xf32> to vector<4x8x1xf32>
    %28 = vector.broadcast %27 : vector<4x8x1xf32> to vector<4x8x8xf32>
    %29 = arith.subf %25, %28 : vector<4x8x8xf32>
    %30 = math.exp %29 : vector<4x8x8xf32>
    %cst_14 = arith.constant dense<0.000000e+00> : vector<4x8xf32>
    %31 = vector.multi_reduction <add>, %30, %cst_14 [2] : vector<4x8x8xf32> to vector<4x8xf32>
    %32 = vector.shape_cast %31 : vector<4x8xf32> to vector<4x8x1xf32>
    %33 = tpu.reciprocal %32 : vector<4x8x1xf32> -> vector<4x8x1xf32>
    %34 = vector.broadcast %33 : vector<4x8x1xf32> to vector<4x8x8xf32>
    %35 = arith.mulf %30, %34 : vector<4x8x8xf32>
    %36 = arith.truncf %35 : vector<4x8x8xf32> to vector<4x8x8xbf16>
    %c0_15 = arith.constant 0 : index
    %c0_16 = arith.constant 0 : index
    %c0_17 = arith.constant 0 : index
    %c0_18 = arith.constant 0 : index
    %c0_19 = arith.constant 0 : index
    %37 = vector.load %arg17[%c0_15, %c0_16, %c0_17, %c0_18, %c0_19] : memref<1x1x4x8x8xbf16, #tpu.memory_space<vmem>>, vector<1x1x4x8x8xbf16>
    %38 = vector.shape_cast %37 : vector<1x1x4x8x8xbf16> to vector<4x8x8xbf16>
    %39 = vector.shape_cast %36 : vector<4x8x8xbf16> to vector<1x1x4x8x8xbf16>
    tpu.vector_store %arg17[%c0_15, %c0_16, %c0_17, %c0_18, %c0_19], %39 {strides = array<i32>} : memref<1x1x4x8x8xbf16, #tpu.memory_space<vmem>>, vector<1x1x4x8x8xbf16>,
    %40 = arith.truncf %35 : vector<4x8x8xf32> to vector<4x8x8xbf16>
    %cst_20 = arith.constant dense<0.000000e+00> : vector<4x8x8xf32>
    %41 = tpu.matmul %19, %40, %cst_20 {dimension_numbers = #tpu.dot_dimension_numbers<[2], [2], [1], [1], [0, 0, 0, 1, 1, 1], [0], [0]>} : vector<4x8x8xbf16>, vector<4x8x8xbf16>, vector<4x8x8xf32> -> vector<4x8x8xf32>
    %42 = vector.shape_cast %41 : vector<4x8x8xf32> to vector<32x8xf32>
    %43 = arith.truncf %42 : vector<32x8xf32> to vector<32x8xbf16>
    %c0_21 = arith.constant 0 : index
    %c0_22 = arith.constant 0 : index
    %c0_23 = arith.constant 0 : index
    %44 = vector.load %arg6[%c0_21, %c0_22, %c0_23] : memref<1x32x32xbf16, #tpu.memory_space<vmem>>, vector<1x32x32xbf16>
    %45 = vector.shape_cast %44 : vector<1x32x32xbf16> to vector<32x32xbf16>
    %cst_24 = arith.constant dense<0.000000e+00> : vector<8x32xf32>
    %46 = tpu.matmul %43, %45, %cst_24 {dimension_numbers = #tpu.dot_dimension_numbers<[0], [0], [1], [1], [0, 1, 1, 1], [], []>} : vector<32x8xbf16>, vector<32x32xbf16>, vector<8x32xf32> -> vector<8x32xf32>
    %c0_25 = arith.constant 0 : index
    %c0_26 = arith.constant 0 : index
    %c0_27 = arith.constant 0 : index
    %47 = vector.load %arg7[%c0_25, %c0_26, %c0_27] : memref<1x1x32xf32, #tpu.memory_space<vmem>>, vector<1x1x32xf32>
    %48 = vector.shape_cast %47 : vector<1x1x32xf32> to vector<1x32xf32>
    %49 = vector.broadcast %48 : vector<1x32xf32> to vector<8x32xf32>
    %50 = arith.addf %46, %49 : vector<8x32xf32>
    %51 = arith.addf %4, %50 : vector<8x32xf32>
    %cst_28 = arith.constant dense<0.000000e+00> : vector<8xf32>
    %52 = vector.multi_reduction <add>, %51, %cst_28 [1] : vector<8x32xf32> to vector<8xf32>
    %53 = vector.shape_cast %52 : vector<8xf32> to vector<8x1xf32>
    %cst_29 = arith.constant 3.200000e+01 : f32
    %54 = vector.broadcast %cst_29 : f32 to vector<8x1xf32>
    %55 = arith.divf %53, %54 : vector<8x1xf32>
    %56 = vector.broadcast %55 : vector<8x1xf32> to vector<8x32xf32>
    %57 = arith.subf %51, %56 : vector<8x32xf32>
    %58 = arith.mulf %57, %57 : vector<8x32xf32>
    %cst_30 = arith.constant dense<0.000000e+00> : vector<8xf32>
    %59 = vector.multi_reduction <add>, %58, %cst_30 [1] : vector<8x32xf32> to vector<8xf32>
    %60 = vector.shape_cast %59 : vector<8xf32> to vector<8x1xf32>
    %cst_31 = arith.constant 3.200000e+01 : f32
    %61 = vector.broadcast %cst_31 : f32 to vector<8x1xf32>
    %62 = arith.divf %60, %61 : vector<8x1xf32>
    %63 = vector.broadcast %55 : vector<8x1xf32> to vector<8x32xf32>
    %64 = arith.subf %51, %63 : vector<8x32xf32>
    %cst_32 = arith.constant 9.99999974E-6 : f32
    %65 = vector.broadcast %cst_32 : f32 to vector<8x1xf32>
    %66 = arith.addf %62, %65 : vector<8x1xf32>
    %67 = math.rsqrt %66 : vector<8x1xf32>
    %68 = vector.broadcast %67 : vector<8x1xf32> to vector<8x32xf32>
    %69 = arith.mulf %64, %68 : vector<8x32xf32>
    %c0_33 = arith.constant 0 : index
    %c0_34 = arith.constant 0 : index
    %c0_35 = arith.constant 0 : index
    %70 = vector.load %arg8[%c0_33, %c0_34, %c0_35] : memref<1x1x32xf32, #tpu.memory_space<vmem>>, vector<1x1x32xf32>
    %71 = vector.shape_cast %70 : vector<1x1x32xf32> to vector<1x32xf32>
    %72 = vector.broadcast %71 : vector<1x32xf32> to vector<8x32xf32>
    %73 = arith.mulf %69, %72 : vector<8x32xf32>
    %c0_36 = arith.constant 0 : index
    %c0_37 = arith.constant 0 : index
    %c0_38 = arith.constant 0 : index
    %74 = vector.load %arg9[%c0_36, %c0_37, %c0_38] : memref<1x1x32xf32, #tpu.memory_space<vmem>>, vector<1x1x32xf32>
    %75 = vector.shape_cast %74 : vector<1x1x32xf32> to vector<1x32xf32>
    %76 = vector.broadcast %75 : vector<1x32xf32> to vector<8x32xf32>
    %77 = arith.addf %73, %76 : vector<8x32xf32>
    %78 = arith.truncf %77 : vector<8x32xf32> to vector<8x32xbf16>
    %c0_39 = arith.constant 0 : index
    %c0_40 = arith.constant 0 : index
    %c0_41 = arith.constant 0 : index
    %79 = vector.load %arg10[%c0_39, %c0_40, %c0_41] : memref<1x32x64xbf16, #tpu.memory_space<vmem>>, vector<1x32x64xbf16>
    %80 = vector.shape_cast %79 : vector<1x32x64xbf16> to vector<32x64xbf16>
    %cst_42 = arith.constant dense<0.000000e+00> : vector<8x64xf32>
    %81 = tpu.matmul %78, %80, %cst_42 {dimension_numbers = #tpu.dot_dimension_numbers<[1], [0], [0], [1], [0, 0, 1, 1], [], []>} : vector<8x32xbf16>, vector<32x64xbf16>, vector<8x64xf32> -> vector<8x64xf32>
    %c0_43 = arith.constant 0 : index
    %c0_44 = arith.constant 0 : index
    %c0_45 = arith.constant 0 : index
    %82 = vector.load %arg11[%c0_43, %c0_44, %c0_45] : memref<1x1x64xf32, #tpu.memory_space<vmem>>, vector<1x1x64xf32>
    %83 = vector.shape_cast %82 : vector<1x1x64xf32> to vector<1x64xf32>
    %84 = vector.broadcast %83 : vector<1x64xf32> to vector<8x64xf32>
    %85 = arith.addf %81, %84 : vector<8x64xf32>
    %cst_46 = arith.constant 0.000000e+00 : f32
    %86 = vector.broadcast %cst_46 : f32 to vector<8x64xf32>
    %87 = arith.maximumf %85, %86 : vector<8x64xf32>
    %88 = arith.truncf %87 : vector<8x64xf32> to vector<8x64xbf16>
    %c0_47 = arith.constant 0 : index
    %c0_48 = arith.constant 0 : index
    %c0_49 = arith.constant 0 : index
    %89 = vector.load %arg12[%c0_47, %c0_48, %c0_49] : memref<1x64x32xbf16, #tpu.memory_space<vmem>>, vector<1x64x32xbf16>
    %90 = vector.shape_cast %89 : vector<1x64x32xbf16> to vector<64x32xbf16>
    %cst_50 = arith.constant dense<0.000000e+00> : vector<8x32xf32>
    %91 = tpu.matmul %88, %90, %cst_50 {dimension_numbers = #tpu.dot_dimension_numbers<[1], [0], [0], [1], [0, 0, 1, 1], [], []>} : vector<8x64xbf16>, vector<64x32xbf16>, vector<8x32xf32> -> vector<8x32xf32>
    %c0_51 = arith.constant 0 : index
    %c0_52 = arith.constant 0 : index
    %c0_53 = arith.constant 0 : index
    %92 = vector.load %arg13[%c0_51, %c0_52, %c0_53] : memref<1x1x32xf32, #tpu.memory_space<vmem>>, vector<1x1x32xf32>
    %93 = vector.shape_cast %92 : vector<1x1x32xf32> to vector<1x32xf32>
    %94 = vector.broadcast %93 : vector<1x32xf32> to vector<8x32xf32>
    %95 = arith.addf %91, %94 : vector<8x32xf32>
    %96 = arith.addf %77, %95 : vector<8x32xf32>
    %cst_54 = arith.constant dense<0.000000e+00> : vector<8xf32>
    %97 = vector.multi_reduction <add>, %96, %cst_54 [1] : vector<8x32xf32> to vector<8xf32>
    %98 = vector.shape_cast %97 : vector<8xf32> to vector<8x1xf32>
    %cst_55 = arith.constant 3.200000e+01 : f32
    %99 = vector.broadcast %cst_55 : f32 to vector<8x1xf32>
    %100 = arith.divf %98, %99 : vector<8x1xf32>
    %101 = vector.broadcast %100 : vector<8x1xf32> to vector<8x32xf32>
    %102 = arith.subf %96, %101 : vector<8x32xf32>
    %103 = arith.mulf %102, %102 : vector<8x32xf32>
    %cst_56 = arith.constant dense<0.000000e+00> : vector<8xf32>
    %104 = vector.multi_reduction <add>, %103, %cst_56 [1] : vector<8x32xf32> to vector<8xf32>
    %105 = vector.shape_cast %104 : vector<8xf32> to vector<8x1xf32>
    %cst_57 = arith.constant 3.200000e+01 : f32
    %106 = vector.broadcast %cst_57 : f32 to vector<8x1xf32>
    %107 = arith.divf %105, %106 : vector<8x1xf32>
    %108 = vector.broadcast %100 : vector<8x1xf32> to vector<8x32xf32>
    %109 = arith.subf %96, %108 : vector<8x32xf32>
    %cst_58 = arith.constant 9.99999974E-6 : f32
    %110 = vector.broadcast %cst_58 : f32 to vector<8x1xf32>
    %111 = arith.addf %107, %110 : vector<8x1xf32>
    %112 = math.rsqrt %111 : vector<8x1xf32>
    %113 = vector.broadcast %112 : vector<8x1xf32> to vector<8x32xf32>
    %114 = arith.mulf %109, %113 : vector<8x32xf32>
    %c0_59 = arith.constant 0 : index
    %c0_60 = arith.constant 0 : index
    %c0_61 = arith.constant 0 : index
    %115 = vector.load %arg14[%c0_59, %c0_60, %c0_61] : memref<1x1x32xf32, #tpu.memory_space<vmem>>, vector<1x1x32xf32>
    %116 = vector.shape_cast %115 : vector<1x1x32xf32> to vector<1x32xf32>
    %117 = vector.broadcast %116 : vector<1x32xf32> to vector<8x32xf32>
    %118 = arith.mulf %114, %117 : vector<8x32xf32>
    %c0_62 = arith.constant 0 : index
    %c0_63 = arith.constant 0 : index
    %c0_64 = arith.constant 0 : index
    %119 = vector.load %arg15[%c0_62, %c0_63, %c0_64] : memref<1x1x32xf32, #tpu.memory_space<vmem>>, vector<1x1x32xf32>
    %120 = vector.shape_cast %119 : vector<1x1x32xf32> to vector<1x32xf32>
    %121 = vector.broadcast %120 : vector<1x32xf32> to vector<8x32xf32>
    %122 = arith.addf %118, %121 : vector<8x32xf32>
    %c0_65 = arith.constant 0 : index
    %c0_66 = arith.constant 0 : index
    %c0_67 = arith.constant 0 : index
    %123 = vector.load %arg16[%c0_65, %c0_66, %c0_67] : memref<1x8x32xf32, #tpu.memory_space<vmem>>, vector<1x8x32xf32>
    %124 = vector.shape_cast %123 : vector<1x8x32xf32> to vector<8x32xf32>
    %125 = vector.shape_cast %122 : vector<8x32xf32> to vector<1x8x32xf32>
    tpu.vector_store %arg16[%c0_65, %c0_66, %c0_67], %125 {strides = array<i32>} : memref<1x8x32xf32, #tpu.memory_space<vmem>>, vector<1x8x32xf32>,
    return
  }
  func.func @transform_0(%arg0: i32, %arg1: i32) -> (i32, i32, i32) {
    %c0_i32 = arith.constant 0 : i32
    %c0_i32_0 = arith.constant 0 : i32
    %c0_i32_1 = arith.constant 0 : i32
    return %arg0, %c0_i32, %c0_i32_0 : i32, i32, i32
  }
  func.func @transform_1(%arg0: i32, %arg1: i32) -> (i32, i32, i32) {
    %c1_i32 = arith.constant 1 : i32
    %0 = arith.minsi %arg1, %c1_i32 : i32
    %c0_i32 = arith.constant 0 : i32
    %c0_i32_0 = arith.constant 0 : i32
    %c0_i32_1 = arith.constant 0 : i32
    return %0, %c0_i32, %c0_i32_0 : i32, i32, i32
  }
  func.func @transform_2(%arg0: i32, %arg1: i32) -> (i32, i32, i32) {
    %c0_i32 = arith.constant 0 : i32
    %c0_i32_0 = arith.constant 0 : i32
    %c0_i32_1 = arith.constant 0 : i32
    return %arg1, %c0_i32, %c0_i32_0 : i32, i32, i32
  }
  func.func @transform_3(%arg0: i32, %arg1: i32) -> (i32, i32, i32) {
    %c0_i32 = arith.constant 0 : i32
    %c0_i32_0 = arith.constant 0 : i32
    %c0_i32_1 = arith.constant 0 : i32
    return %arg1, %c0_i32, %c0_i32_0 : i32, i32, i32
  }
  func.func @transform_4(%arg0: i32, %arg1: i32) -> (i32, i32, i32) {
    %c0_i32 = arith.constant 0 : i32
    %c0_i32_0 = arith.constant 0 : i32
    %c0_i32_1 = arith.constant 0 : i32
    return %arg1, %c0_i32, %c0_i32_0 : i32, i32, i32
  }
  func.func @transform_5(%arg0: i32, %arg1: i32) -> (i32, i32, i32) {
    %c0_i32 = arith.constant 0 : i32
    %c0_i32_0 = arith.constant 0 : i32
    %c0_i32_1 = arith.constant 0 : i32
    return %arg1, %c0_i32, %c0_i32_0 : i32, i32, i32
  }
  func.func @transform_6(%arg0: i32, %arg1: i32) -> (i32, i32, i32) {
    %c0_i32 = arith.constant 0 : i32
    %c0_i32_0 = arith.constant 0 : i32
    %c0_i32_1 = arith.constant 0 : i32
    return %arg1, %c0_i32, %c0_i32_0 : i32, i32, i32
  }
  func.func @transform_7(%arg0: i32, %arg1: i32) -> (i32, i32, i32) {
    %c0_i32 = arith.constant 0 : i32
    %c0_i32_0 = arith.constant 0 : i32
    %c0_i32_1 = arith.constant 0 : i32
    return %arg1, %c0_i32, %c0_i32_0 : i32, i32, i32
  }
  func.func @transform_8(%arg0: i32, %arg1: i32) -> (i32, i32, i32) {
    %c0_i32 = arith.constant 0 : i32
    %c0_i32_0 = arith.constant 0 : i32
    %c0_i32_1 = arith.constant 0 : i32
    return %arg1, %c0_i32, %c0_i32_0 : i32, i32, i32
  }
  func.func @transform_9(%arg0: i32, %arg1: i32) -> (i32, i32, i32) {
    %c0_i32 = arith.constant 0 : i32
    %c0_i32_0 = arith.constant 0 : i32
    %c0_i32_1 = arith.constant 0 : i32
    return %arg1, %c0_i32, %c0_i32_0 : i32, i32, i32
  }
  func.func @transform_10(%arg0: i32, %arg1: i32) -> (i32, i32, i32) {
    %c0_i32 = arith.constant 0 : i32
    %c0_i32_0 = arith.constant 0 : i32
    %c0_i32_1 = arith.constant 0 : i32
    return %arg1, %c0_i32, %c0_i32_0 : i32, i32, i32
  }
  func.func @transform_11(%arg0: i32, %arg1: i32) -> (i32, i32, i32) {
    %c0_i32 = arith.constant 0 : i32
    %c0_i32_0 = arith.constant 0 : i32
    %c0_i32_1 = arith.constant 0 : i32
    return %arg1, %c0_i32, %c0_i32_0 : i32, i32, i32
  }
  func.func @transform_12(%arg0: i32, %arg1: i32) -> (i32, i32, i32) {
    %c0_i32 = arith.constant 0 : i32
    %c0_i32_0 = arith.constant 0 : i32
    %c0_i32_1 = arith.constant 0 : i32
    return %arg1, %c0_i32, %c0_i32_0 : i32, i32, i32
  }
  func.func @transform_13(%arg0: i32, %arg1: i32) -> (i32, i32, i32) {
    %c0_i32 = arith.constant 0 : i32
    %c0_i32_0 = arith.constant 0 : i32
    %c0_i32_1 = arith.constant 0 : i32
    return %arg1, %c0_i32, %c0_i32_0 : i32, i32, i32
  }
  func.func @transform_14(%arg0: i32, %arg1: i32) -> (i32, i32, i32) {
    %c0_i32 = arith.constant 0 : i32
    %c0_i32_0 = arith.constant 0 : i32
    %c0_i32_1 = arith.constant 0 : i32
    return %arg0, %c0_i32, %c0_i32_0 : i32, i32, i32
  }
  func.func @transform_15(%arg0: i32, %arg1: i32) -> (i32, i32, i32, i32, i32) {
    %c0_i32 = arith.constant 0 : i32
    %c0_i32_0 = arith.constant 0 : i32
    %c0_i32_1 = arith.constant 0 : i32
    %c0_i32_2 = arith.constant 0 : i32
    return %arg0, %arg1, %c0_i32, %c0_i32_0, %c0_i32_1 : i32, i32, i32, i32, i32
  }
}

</mosaic_0001>

<bundles_post_ra>
// kernel: tpu_custom_call.1
= control target key start
LH: loop header
LB: loop body
LE: loop exit
PB: predicated region body
PF: predicated region fallthrough
CT: control target
= control target key end

     0   :  { %s2688_s0 = inlined_call_operand.vmem [shape: f32[2,8,32], index: 0, kind: input, shape index: {}]   ;;  %s2689_s1 = inlined_call_operand.vmem [shape: f32[2,8,8], index: 1, kind: input, shape index: {}]   ;;  %s2690_s2 = inlined_call_operand.vmem [shape: bf16[2,96,32], index: 2, kind: input, shape index: {}]   ;;  %s2691_s3 = inlined_call_operand.vmem [shape: f32[2,96,1], index: 3, kind: input, shape index: {}]   ;;  %s2692_s4 = inlined_call_operand.vmem [shape: bf16[2,32,32], index: 4, kind: input, shape index: {}]   ;;  %s2693_s5 = inlined_call_operand.vmem [shape: f32[2,1,32], index: 5, kind: input, shape index: {}]   ;;  %s2694_s6 = inlined_call_operand.vmem [shape: f32[2,1,32], index: 6, kind: input, shape index: {}]   ;;  %s2695_s7 = inlined_call_operand.vmem [shape: f32[2,1,32], index: 7, kind: input, shape index: {}]   ;;  %s2696_s8 = inlined_call_operand.vmem [shape: bf16[2,32,64], index: 8, kind: input, shape index: {}]   ;;  %s2697_s9 = inlined_call_operand.vmem [shape: f32[2,1,64], index: 9, kind: input, shape index: {}]   ;;  %s2698_s10 = inlined_call_operand.vmem [shape: bf16[2,64,32], index: 10, kind: input, shape index: {}]   ;;  %s2699_s11 = inlined_call_operand.vmem [shape: f32[2,1,32], index: 11, kind: input, shape index: {}]   ;;  %s2700_s12 = inlined_call_operand.vmem [shape: f32[2,1,32], index: 12, kind: input, shape index: {}]   ;;  %s2701_s13 = inlined_call_operand.vmem [shape: f32[2,1,32], index: 13, kind: input, shape index: {}]   ;;  %s2702_s14 = inlined_call_operand.hbm [shape: f32[2,8,32], index: 14, kind: output, shape index: {0}]   ;;  %s2703_s15 = inlined_call_operand.hbm [shape: bf16[2,2,4,8,8], index: 15, kind: output, shape index: {1}]  }
   0x1   :  { %2728 = sst [smem:[#allocation26_spill]] %s2688_s0 }
   0x2   :  { %2729 = sst [smem:[#allocation27_spill]] %s2689_s1 }
   0x3   :  { %2730 = sst [smem:[#allocation28_spill]] %s2690_s2 }
   0x4   :  { %2731 = sst [smem:[#allocation29_spill]] %s2691_s3 }
   0x5   :  { %2732 = sst [smem:[#allocation30_spill]] %s2692_s4 }
   0x6   :  { %2733 = sst [smem:[#allocation31_spill]] %s2693_s5 }
   0x7   :  { %2734 = sst [smem:[#allocation32_spill]] %s2694_s6 }
   0x8   :  { %2735 = sst [smem:[#allocation33_spill]] %s2695_s7 }
   0x9   :  { %2736 = sst [smem:[#allocation34_spill]] %s2696_s8 }
   0xa   :  { %2737 = sst [smem:[#allocation35_spill]] %s2697_s9 }
   0xb   :  { %2738 = sst [smem:[#allocation36_spill]] %s2698_s10 }
   0xc   :  { %2739 = sst [smem:[#allocation37_spill]] %s2699_s11 }
   0xd   :  { %2740 = sst [smem:[#allocation38_spill]] %s2700_s12 }
   0xe   :  { %2741 = sst [smem:[#allocation39_spill]] %s2701_s13 }
   0xf   :  { %2742 = sst [smem:[#allocation40_spill]] %s2702_s14 }
  0x10   :  { %2743 = sst [smem:[#allocation41_spill]] %s2703_s15 }
  0x11   :  { %21 = vsyncpa [#allocation3], 0 }
  0x12   :  { %23 = vsyncpa [#allocation3 + $0x1], 0 }
  0x13   :  { %24 = vsyncpa [#allocation5], 0 }
  0x14   :  { %26 = vsyncpa [#allocation5 + $0x1], 0  ;;  %s2266_s18 = smov 0   ;;  %s2268_s19 = smov 0  }
  0x15   :  { %s2270_s20 = smov 0   ;;  %s2272_s21 = smov 0  }
  0x16   :  { %s2274_s22 = smov 0   ;;  %s2276_s23 = smov 0  }
  0x17   :  { %s2278_s24 = smov 0   ;;  %s2280_s25 = smov 0  }
  0x18   :  { %s2282_s26 = smov 0   ;;  %s2284_s27 = smov 0  }
  0x19   :  { %s2286_s28 = smov 0  }
  0x1a LB: > { %2744 = sst [smem:[#allocation8_spill]] %s2140_s18  ;;  %s1766_s29 = sadd.s32 4294967295, %s2180_s28   ;;  %s2180_s28 = sphi %s2286_s28, %s32_s28   ;;  %s2176_s27 = sphi %s2284_s27, %s2816_s27   ;;  %s2172_s26 = sphi %s2282_s26, %s2815_s26   ;;  %s2168_s25 = sphi %s2280_s25, %s2814_s25   ;;  %s2164_s24 = sphi %s2278_s24, %s2813_s24   ;;  %s2160_s23 = sphi %s2276_s23, %s2812_s23   ;;  %s2156_s22 = sphi %s2274_s22, %s2811_s22   ;;  %s2152_s21 = sphi %s2272_s21, %s2810_s21   ;;  %s2148_s20 = sphi %s2270_s20, %s2809_s20   ;;  %s2144_s19 = sphi %s2268_s19, %s2808_s19   ;;  %s2140_s18 = sphi %s2266_s18, %s2807_s18  }
  0x1b   : > { %2745 = sst [smem:[#allocation9_spill]] %s2144_s19  ;;  %s1767_s30 = sadd.s32 4294967294, %s2180_s28  }
  0x1c   : > { %2746 = sst [smem:[#allocation10_spill]] %s2148_s20  ;;  %s41_s16 = sadd.s32 1, %s2172_s26 }
  0x1d   : > { %2747 = sst [smem:[#allocation11_spill]] %s2152_s21  ;;  %s44_s17 = sadd.s32 1, %s2176_s27 }
  0x1e   : > { %2748 = sst [smem:[#allocation12_spill]] %s2156_s22  ;;  %p42_p0 = scmp.ge.s32.totalorder %s41_s16, 2 }
  0x1f   : > { %2749 = sst [smem:[#allocation13_spill]] %s2160_s23  ;;  %s419_s14 = sadd.s32 1, %s2160_s23 }
  0x20   : > { %2750 = sst [smem:[#allocation14_spill]] %s2168_s25  ;;  %p429_p1 = scmp.ne.s32.totalorder %s2160_s23, %s2156_s22 }
  0x21   : > { %2751 = sst [smem:[#allocation15_spill]] %s2172_s26  ;;  %p2328_p2 = scmp.eq.s32.totalorder %s1766_s29, 3 }
  0x22   : > { %2752 = sst [smem:[#allocation16_spill]] %s2176_s27  ;;  %s2818_s16 = smov (%p42_p0, %s41_s16), 0 }
  0x23   : > { %2753 = sst [smem:[#allocation17_spill]] %s2180_s28  ;;  %s2820_s17 = smov (!%p42_p0, %s44_s17), %s2176_s27 }
  0x24   : > { %2755 = sst [smem:[#allocation18_spill]] %s2818_s16  ;;  %p2337_p3 = por %p2328_p2, %p429_p1 }
  0x25   : > { %p435_p4 = scmp.ne.s32.totalorder %s2156_s22, %s2152_s21  ;;  %p46_p5 = scmp.ge.s32.totalorder %s2820_s17, 2 }
  0x26   : > { %s2756_s13 = scalar_select %p2337_p3, 1, 0 }
  0x27   : > { %p2343_p6 = scmp.eq.s32.totalorder %s1767_s30, 3  ;;  %s443_s12 = ssub.s32 %s2172_s26, %s2818_s16 }
  0x28   : > { %2757 = sst [smem:[#allocation19_spill]] %s2756_s13  ;;  %s447_s10 = sadd.s32 1, %s2148_s20 }
  0x29   : > { %s2822_s17 = smov (%p46_p5, %s2820_s17), 0  ;;  %p2354_p7 = por %p2343_p6, %p435_p4 }
  0x2a   : > { %2759 = sst [smem:[#allocation20_spill]] %s2822_s17  ;;  %p457_p8 = scmp.ne.s32.totalorder %s2148_s20, %s2144_s19 }
  0x2b   : > { %s2760_s11 = scalar_select %p2354_p7, 1, 0 }
  0x2c   : > { %s416_s21 = ssub.s32 %s2176_s27, %s2822_s17  ;;  %p463_p9 = scmp.ne.s32.totalorder %s2144_s19, %s2140_s18 }
  0x2d   : > { %2761 = sst [smem:[#allocation21_spill]] %s2760_s11  ;;  %p417_p10 = scmp.eq.s32.totalorder %s416_s21, 0 }
  0x2e   : > { %s444_s30 = sor.u32 %s443_s12, %s416_s21  ;;  %p2366_p12 = por %p457_p8, %p2328_p2 }
  0x2f   : > { %p445_p11 = scmp.eq.s32.totalorder %s444_s30, 0  ;;  %p2378_p13 = por %p463_p9, %p2343_p6 }
  0x30   : > { %s2762_s13 = scalar_select %p2366_p12, 1, 0 }
  0x31   : > { %s2371_s16 = scalar_select %p417_p10, %s2160_s23, %s419_s14  }
  0x32   : > { %2763 = sst [smem:[#allocation22_spill]] %s2762_s13  ;;  %p1770_p0 = scmp.ge.s32.totalorder %s2180_s28, 1 }
  0x33   : > { %2764 = sst [smem:[#allocation23_spill]] %s2371_s16  ;;  %p582_p1 = scmp.lt.s32.totalorder %s2180_s28, 5 }
  0x34   : > { %s2374_s26 = scalar_select %p445_p11, %s2148_s20, %s447_s10  }
  0x35   : > { %s2766_s9 = scalar_select %p2378_p13, 1, 0 }
  0x36   : > { %2765 = sst [smem:[#allocation24_spill]] %s2374_s26  ;;  %p583_p4 = pnand %p1770_p0, %p582_p1 }
  0x37   : > { %2767 = sst [smem:[#allocation25_spill]] %s2766_s9  ;;  %s2713_s12 = sand.u32 (!%p583_p4), 1, %s2156_s22  }
  0x38   : > { %586 = sbr.rel (%p583_p4) target bundleno = 2080 (0x820), region = 76  ;;  %s2714_s10 = sand.u32 (!%p583_p4), 1, %s2144_s19  }
  0x39   : > { %s1771_s14 = sshll.u32 (!%p583_p4), %s2713_s12, 3  ;;  %s1772_s15 = sshll.u32 (!%p583_p4), %s2714_s10, 4 }
  0x3a   : > { %p686_p2 = scmp.lt.s32.totalorder (!%p583_p4), %s2168_s25, 1  ;;  %p690_p5 = scmp.lt.s32.totalorder (!%p583_p4), %s2164_s24, 1 }
  0x3b   : > { %s2768_s0 = sld [smem:[#allocation26_spill]] (!%p583_p4)  ;;  %p1786_p6 = scmp.ne.s32.totalorder (!%p583_p4), %s2164_s24, 0 }
  0x3c   : > { %s2769_s2 = sld [smem:[#allocation28_spill]] (!%p583_p4) }
  0x3d   : > { %s687_s21 = scalar_select %p686_p2, %s2168_s25, 1 }
  0x3e   : > { %s2394_s29 = scalar_select %p690_p5, %s2164_s24, 1 }
  0x3f   : > { %s1773_s30 = sshll.u32 %s687_s21, 3  ;;  %s2770_s1 = sld [smem:[#allocation27_spill]] }
  0x40   : > { %s1886_s10 = smul.u32 48, %s2394_s29  ;;  %s1868_s11 = sshll.u32 %s2394_s29, 4 }
  0x41   : > { %s689_s12 = scalar_lea.vmem %s2768_s0, %s1773_s30  ;;  %s1887_s9 = smul.u32 96, %s2394_s29 }
  0x42   : > { %s693_s16 = scalar_select %p690_p5, %s2394_s29, 1 }
  0x43   : > { %s2404_s20 = scalar_lea.vmem %s2769_s2, %s1886_s10  ;;  %s2771_s3 = sld [smem:[#allocation29_spill]] }
  0x44   : > { %s1777_s18 = sshll.u32 %s693_s16, 3  ;;  %s2772_s4 = sld [smem:[#allocation30_spill]] }
  0x45   : > { %s2411_s22 = scalar_lea.vmem %s2770_s1, %s1777_s18  ;;  %s2776_s8 = sld [smem:[#allocation34_spill]] }
  0x46   : > { %s1870_s25 = sshll.u32 %s2394_s29, 5  ;;  %s2778_s16 = sld [smem:[#allocation37_spill]] }
  0x47   : > { %s2779_s28 = sld [smem:[#allocation36_spill]]  ;;  %s2462_s0 = scalar_lea.vmem [#allocation2], %s1771_s14 }
  0x48   : > { %s2780_s1 = sld [smem:[#allocation38_spill]] }
  0x49   : > { %s2416_s30 = scalar_lea.vmem %s2771_s3, %s1887_s9  ;;  %s2777_s3 = sld [smem:[#allocation35_spill]] }
  0x4a   : > { %s2421_s23 = scalar_lea.vmem %s2772_s4, %s1868_s11 }
  0x4b   : > { %s2438_s17 = scalar_lea.vmem %s2776_s8, %s1868_s11  ;;  %s2781_s8 = sld [smem:[#allocation39_spill]] }
  0x4c   : > { %s737_s5 = scalar_lea.vmem %s2778_s16, %s2394_s29 }
  0x4d   : > { %s2452_s6 = scalar_lea.vmem %s2779_s28, %s1870_s25  ;;  %748 = sbr.rel (%p1786_p6) target bundleno = 84 (0x54), region = 80 }
  0x4e   : > { %s740_s27 = scalar_lea.vmem %s2780_s1, %s2394_s29 }
  0x4f   : > { %s729_s4 = scalar_lea.vmem %s2777_s3, %s2394_s29  ;;  %s2464_s3 = scalar_lea.vmem [#allocation4], %s1772_s15 }
  0x51   : > { %s743_s7 = scalar_lea.vmem %s2781_s8, %s2394_s29 }
  0x52   : > { %v749_v0 = vld [vmem:[%s689_s12] sm:$0xff]  ;;  %vm750_vm0 = vcmask 261120  }
  0x53   : > { %751 = vst.msk [vmem:[%s2462_s0] sm:$0xff] %vm750_vm0, %v749_v0 }
  0x54 PF: > { %vm868_vm1 = vcmask 261120   ;;  %v766_v2 = vld [vmem:[%s2416_s30] sm:$0xff]  ;;  %v2182_v4 = vmov 0   ;;  %v768_v5 = vld [vmem:[%s2416_s30 + $0x10] sm:$0xff]  ;;  %v767_v8 = vld [vmem:[%s2416_s30 + $0x8] sm:$0xff]  ;;  %vm962_vm2 = vcmask 1043456  }
  0x55   : > { %1992 = vset.pattern.permute.xlu0 %v2182_v4  ;;  %1993 = vset.pattern.permute.xlu1 %v2182_v4  ;;  %v1871_v7 = vld [vmem:[%s2404_s20] sm:$0xff]  ;;  %v769_v9 = vld [vmem:[%s2416_s30 + $0x18] sm:$0xff]  ;;  %v772_v10 = vld [vmem:[%s2416_s30 + $0x30] sm:$0xff]  ;;  %vm958_vm3 = vcmask 64512   ;;  %vm1184_vm8 = vcmask 60416   ;;  %s2784_s14 = sld [smem:[#allocation32_spill]] }
  0x56   : > { %780 = vperm.xlu0 %1992, %v766_v2   ;;  %790 = vperm.xlu1 %1993, %v768_v5   ;;  %v773_v11 = vld [vmem:[%s2416_s30 + $0x38] sm:$0xff]  ;;  %v1872_v12 = vld [vmem:[%s2404_s20 + $0x8] sm:$0xff]  ;;  %v770_v13 = vld [vmem:[%s2416_s30 + $0x20] sm:$0xff]  ;;  %s2786_s16 = sld [smem:[#allocation33_spill]] }
  0x57   : > { %1994 = vset.pattern.permute.xlu2 %v2182_v4  ;;  %v771_v14 = vld [vmem:[%s2416_s30 + $0x28] sm:$0xff]  ;;  %v1873_v15 = vld [vmem:[%s2404_s20 + $0x10] sm:$0xff]  ;;  %v1874_v16 = vld [vmem:[%s2404_s20 + $0x18] sm:$0xff]  ;;  %s2789_s10 = sld [smem:[#allocation14_spill]] }
  0x58   : > { %800 = vperm.xlu2 %1994, %v770_v13   ;;  %v1876_v53 = vld [vmem:[%s2404_s20 + $0x28] sm:$0xff]  ;;  %v941_v58 = vld [vmem:[%s2411_s22] sm:$0xff] }
  0x59   : > { %v1875_v63 = vld [vmem:[%s2404_s20 + $0x20] sm:$0xff]  ;;  %s2782_s20 = sld [smem:[#allocation31_spill]] }
  0x5a   : > { %v2469_v1 = vld [vmem:[%s2462_s0] sm:$0xff] }
  0x5b   : > { %v753_v3 = vpack.c.bf16 %v2469_v1, %v2469_v1  ;;  %s2785_s15 = scalar_lea.vmem %s2784_s14, %s2394_s29  ;;  %s1519_s14 = sshll.u32 %s2464_s3, 4  ;;  %s1520_s14 = int_to_ptr.vmem [resolvable:$true] %s1519_s14 }
  0x5c   : > { %s2787_s28 = scalar_lea.vmem %s2786_s16, %s2394_s29 }
  0x5d   : > { %v888_v6 = vsel %vm868_vm1, %v753_v3, 0  ;;  %s1862_s21 = sshll.u32 %s2789_s10, 3 }
  0x5e   : > { %897 = vmatpush.bf16.xpose.msra.mxu0 %v888_v6  ;;  %1885 = vmatpush.bf16.xpose.msra.mxu3 %v888_v6 }
  0x5f   : > { %785 = vperm.xlu0 %1992, %v767_v8   ;;  %795 = vperm.xlu1 %1993, %v769_v9   ;;  %s2783_s22 = scalar_lea.vmem %s2782_s20, %s2394_s29  ;;  %s2793_s20 = sld [smem:[#allocation41_spill]] }
  0x60   : > { %805 = vperm.xlu2 %1994, %v771_v14  }
  0x65   : > { %1811 = vmatmul.msk.bf16.vlgmr.msra.gmra.mxu0 %vm868_vm1, %v1871_v7  ;;  %1816 = vmatmul.msk.bf16.vlgmr.msra.gmra.mxu3 %vm868_vm1, %v1876_v53  ;;  %s2794_s12 = smov %s2793_s20 }
  0x67   : > { %810 = vperm.xlu0 %1992, %v772_v10   ;;  %815 = vperm.xlu1 %1993, %v773_v11  }
  0x75   : > { %1812 = vmatmul.msk.bf16.gmra.mxu0 %vm868_vm1, %v1872_v12 }
  0x85   : > { %1813 = vmatmul.msk.bf16.gmra.mxu0 %vm868_vm1, %v1873_v15  ;;  %v774_v15 = vld [vmem:[%s2416_s30 + $0x40] sm:$0xff] }
  0x95   : > { %1814 = vmatmul.msk.bf16.gmra.mxu0 %vm868_vm1, %v1874_v16  ;;  %v775_v16 = vld [vmem:[%s2416_s30 + $0x48] sm:$0xff] }
  0xa5   : > { %1815 = vmatmul.msk.bf16.gmra.mxu0 %vm868_vm1, %v1875_v63 }
  0xb2   : > { %v801_v33 = vpop.permute.xlu2 %800 }
  0xba   : > { %v806_v38 = vpop.permute.xlu2 %805 }
  0xc8   : > { %v781_v17 = vpop.permute.xlu0 %780  ;;  %v791_v25 = vpop.permute.xlu1 %790 }
  0xd1   : > { %v786_v20 = vpop.permute.xlu0 %785  ;;  %v796_v28 = vpop.permute.xlu1 %795 }
  0xd9   : > { %v811_v43 = vpop.permute.xlu0 %810  ;;  %v816_v48 = vpop.permute.xlu1 %815 }
  0xe2   : > { %v899_v18 = vpop.f32.mrf.mxu0 }
  0xe3   : > { %v900_v19 = vadd.f32 %v899_v18, %v781_v17  ;;  %v777_v17 = vld [vmem:[%s2416_s30 + $0x58] sm:$0xff] }
  0xe5   : > { %v929_v23 = vpack.c.bf16 %v900_v19, %v900_v19 }
  0xe8   : > { %v2504_v2 = vpop.f32.mrf.mxu3 }
  0xea   : > { %v901_v21 = vpop.f32.mrf.mxu0 }
  0xeb   : > { %v902_v22 = vadd.f32 %v901_v21, %v786_v20 }
  0xed   : > { %v930_v24 = vpack.c.bf16 %v902_v22, %v902_v22 }
  0xef   : > { %1995 = vxpose.binary.xlu2.c.b16.start.end [1/2] (short) (narrow) %v930_v24, %v929_v23, 16 }
  0xf0   : > { %v2507_v6 = vpop.f32.mrf.mxu3 }
  0xf2   : > { %v904_v26 = vpop.f32.mrf.mxu0 }
  0xf3   : > { %v905_v27 = vadd.f32 %v904_v26, %v791_v25 }
  0xf5   : > { %v931_v31 = vpack.c.bf16 %v905_v27, %v905_v27 }
  0xfa   : > { %v906_v29 = vpop.f32.mrf.mxu0 }
  0xfb   : > { %v907_v30 = vadd.f32 %v906_v29, %v796_v28 }
  0xfd   : > { %v932_v32 = vpack.c.bf16 %v907_v30, %v907_v30 }
  0xff   : > { %1998 = vxpose.binary.xlu0.c.b16.start.end [1/2] (short) (narrow) %v932_v32, %v931_v31, 16 }
 0x102   : > { %v909_v34 = vpop.f32.mrf.mxu0 }
 0x103   : > { %v910_v35 = vadd.f32 %v909_v34, %v801_v33 }
 0x105   : > { %v933_v36 = vpack.c.bf16 %v910_v35, %v910_v35 }
 0x107   : > { %v964_v37 = vsel %vm962_vm2, %v933_v36, 0 }
 0x108   : > { %973 = vmatpush.bf16.msra.mxu1 %v964_v37 }
 0x10a   : > { %v911_v39 = vpop.f32.mrf.mxu0 }
 0x10b   : > { %v912_v40 = vadd.f32 %v911_v39, %v806_v38  ;;  %v776_v38 = vld [vmem:[%s2416_s30 + $0x50] sm:$0xff] }
 0x10d   : > { %v934_v41 = vpack.c.bf16 %v912_v40, %v912_v40 }
 0x10f   : > { %v999_v42 = vsel %vm962_vm2, %v934_v41, 0 }
 0x110   : > { %1008 = vmatpush.bf16.msra.mxu2 %v999_v42 }
 0x112   : > { %v914_v44 = vpop.f32.mrf.mxu0 }
 0x113   : > { %v915_v45 = vadd.f32 %v914_v44, %v811_v43 }
 0x115   : > { %v935_v46 = vpack.c.bf16 %v915_v45, %v915_v45 }
 0x117   : > { %v1034_v47 = vsel %vm962_vm2, %v935_v46, 0 }
 0x118   : > { %1043 = vmatpush.bf16.msrb.mxu3 %v1034_v47 }
 0x11a   : > { %v916_v49 = vpop.f32.mrf.mxu0 }
 0x11b   : > { %v917_v50 = vadd.f32 %v916_v49, %v816_v48 }
 0x11d   : > { %v936_v51 = vpack.c.bf16 %v917_v50, %v917_v50 }
 0x11f   : > { %v1069_v52 = vsel %vm962_vm2, %v936_v51, 0 }
 0x120   : > { %1078 = vmatpush.bf16.msrb.mxu1 %v1069_v52 }
 0x190   : > { %v1996_v54 = vpop.trf.xlu2 }
 0x191   : > { %1817 = vmatmul.msk.bf16.vlgmr.msra.gmra.mxu1 %vm958_vm3, %v1996_v54 }
 0x198   : > { %v1997_v55 = vpop.trf.xlu2 }
 0x199   : > { %1818 = vmatmul.msk.bf16.vlgmr.msra.gmra.mxu2 %vm958_vm3, %v1997_v55 }
 0x1ab   : > { %v1999_v56 = vpop.trf.xlu0 }
 0x1ac   : > { %1819 = vmatmul.msk.bf16.vlgmr.msrb.gmra.mxu3 %vm958_vm3, %v1999_v56 }
 0x1b3   : > { %v2000_v57 = vpop.trf.xlu0 }
 0x1b4   : > { %1820 = vmatmul.msk.bf16.vlgmr.msrb.gmra.mxu1 %vm958_vm3, %v2000_v57  ;;  %v919_v57 = vpop.f32.mrf.mxu0 }
 0x20e   : > { %v975_v59 = vpop.f32.mrf.mxu1 }
 0x20f   : > { %v976_v60 = vadd.f32 %v975_v59, %v941_v58 }
 0x211   : > { %v1084_v61 = vsel %vm958_vm3, %v976_v60, -inf }
 0x212   : > { %1085 = vmax.xlane.f32.xlu1 %v1084_v61 }
 0x216   : > { %v977_v62 = vpop.f32.mrf.mxu1 }
 0x21c   : > { %v1010_v0 = vpop.f32.mrf.mxu2 }
 0x21d   : > { %v1011_v3 = vadd.f32 %v1010_v0, %v941_v58 }
 0x21f   : > { %v1087_v4 = vsel %vm958_vm3, %v1011_v3, -inf }
 0x220   : > { %1088 = vmax.xlane.f32.xlu2 %v1087_v4 }
 0x224   : > { %v1012_v5 = vpop.f32.mrf.mxu2 }
 0x22f   : > { %v1045_v7 = vpop.f32.mrf.mxu3 }
 0x230   : > { %v1046_v8 = vadd.f32 %v1045_v7, %v941_v58 }
 0x231   : > { %v1080_v9 = vpop.f32.mrf.mxu1 }
 0x232   : > { %v1081_v10 = vadd.f32 %v1080_v9, %v941_v58  ;;  %v1090_v11 = vsel %vm958_vm3, %v1046_v8, -inf }
 0x233   : > { %1091 = vmax.xlane.f32.xlu1 %v1090_v11 }
 0x234   : > { %v1093_v12 = vsel %vm958_vm3, %v1081_v10, -inf }
 0x235   : > { %1094 = vmax.xlane.f32.xlu0 %v1093_v12  ;;  %v921_v12 = vpop.f32.mrf.mxu0 }
 0x237   : > { %v1047_v13 = vpop.f32.mrf.mxu3 }
 0x239   : > { %v1082_v14 = vpop.f32.mrf.mxu1 }
 0x24c   : > { %820 = vperm.xlu1 %1993, %v774_v15  }
 0x254   : > { %825 = vperm.xlu1 %1993, %v775_v16  }
 0x25c   : > { %835 = vperm.xlu1 %1993, %v777_v17  }
 0x285   : > { %v1086_v18 = vpop.xlane.xlu1 %1085 }
 0x286   : > { %v1096_v19 = vsub.f32 %v976_v60, %v1086_v18 }
 0x288   : > { %v1100_v20 = vmul.f32 1.442695, %v1096_v19 }
 0x28a   : > { %2008 = vpow2.f32 %v1100_v20 }
 0x290   : > { %v2009_v21 = vpop.eup %2008 }
 0x291   : > { %v1108_v22 = vsel %vm958_vm3, %v2009_v21, 0.0 }
 0x292   : > { %1109 = vadd.xlane.f32.xlu1 %v1108_v22 }
 0x293   : > { %v1089_v23 = vpop.xlane.xlu2 %1088 }
 0x294   : > { %v1097_v24 = vsub.f32 %v1011_v3, %v1089_v23 }
 0x296   : > { %v1102_v25 = vmul.f32 1.442695, %v1097_v24 }
 0x298   : > { %2010 = vpow2.f32 %v1102_v25 }
 0x29e   : > { %v2515_v26 = vpop.eup %2010 }
 0x29f   : > { %v1111_v27 = vsel %vm958_vm3, %v2515_v26, 0.0 }
 0x2a0   : > { %1112 = vadd.xlane.f32.xlu1 %v1111_v27 }
 0x2a6   : > { %v1092_v28 = vpop.xlane.xlu1 %1091 }
 0x2a7   : > { %v1098_v29 = vsub.f32 %v1046_v8, %v1092_v28 }
 0x2a8   : > { %v1095_v30 = vpop.xlane.xlu0 %1094 }
 0x2a9   : > { %v1104_v31 = vmul.f32 1.442695, %v1098_v29  ;;  %v1099_v32 = vsub.f32 %v1081_v10, %v1095_v30 }
 0x2ab   : > { %2012 = vpow2.f32 %v1104_v31  ;;  %v1106_v33 = vmul.f32 1.442695, %v1099_v32 }
 0x2ad   : > { %2014 = vpow2.f32 %v1106_v33 }
 0x2b1   : > { %v2519_v34 = vpop.eup %2012 }
 0x2b2   : > { %v1114_v35 = vsel %vm958_vm3, %v2519_v34, 0.0 }
 0x2b3   : > { %1115 = vadd.xlane.f32.xlu1 %v1114_v35  ;;  %v2523_v36 = vpop.eup %2014 }
 0x2b4   : > { %v1117_v37 = vsel %vm958_vm3, %v2523_v36, 0.0 }
 0x2bb   : > { %1118 = vadd.xlane.f32.xlu1 %v1117_v37 }
 0x2be   : > { %v821_v39 = vpop.permute.xlu1 %820 }
 0x2bf   : > { %v920_v60 = vadd.f32 %v919_v57, %v821_v39 }
 0x2c1   : > { %v937_v3 = vpack.c.bf16 %v920_v60, %v920_v60 }
 0x2c6   : > { %v826_v40 = vpop.permute.xlu1 %825 }
 0x2c7   : > { %v922_v14 = vadd.f32 %v921_v12, %v826_v40 }
 0x2c9   : > { %v938_v18 = vpack.c.bf16 %v922_v14, %v922_v14 }
 0x2ce   : > { %v2528_v41 = vpop.permute.xlu1 %835 }
 0x2d4   : > { %830 = vperm.xlu1 %1993, %v776_v38  }
 0x305   : > { %v1110_v42 = vpop.xlane.xlu1 %1109 }
 0x306   : > { %2016 = vrcp.f32 %v1110_v42  ;;  %v1131_v46 = vand.u32 2147483648, %v1110_v42  ;;  %v1129_v48 = vand.u32 2147483647, %v1110_v42  ;;  %vm1125_vm5 = vweird.f32 %v1110_v42 }
 0x308   : > { %v1132_v51 = vor.u32 1.1754944e-38, %v1131_v46  ;;  %vm1130_vm7 = vcmp.eq.f32.partialorder %v1129_v48, 8.507059e+37 }
 0x30c   : > { %v2017_v43 = vpop.eup %2016 }
 0x30d   : > { %v1121_v44 = vmul.f32 %v2017_v43, %v1110_v42  ;;  %vm1126_vm4 = vweird.f32 %v2017_v43 }
 0x30e   : > { %vm1127_vm6 = vmor %vm1125_vm5, %vm1126_vm4 }
 0x30f   : > { %v1122_v45 = vsub.f32 1.0, %v1121_v44 }
 0x311   : > { %v1123_v47 = vmul.f32 %v2017_v43, %v1122_v45  ;;  %v927_v45 = vadd.f32 %v2507_v6, %v2528_v41 }
 0x313   : > { %v1113_v49 = vpop.xlane.xlu1 %1112  ;;  %v1124_v50 = vadd.f32 %v2017_v43, %v1123_v47 }
 0x314   : > { %2018 = vrcp.f32 %v1113_v49  ;;  %v1145_v62 = vand.u32 2147483648, %v1113_v49  ;;  %v1143_v0 = vand.u32 2147483647, %v1113_v49  ;;  %vm1139_vm10 = vweird.f32 %v1113_v49 }
 0x315   : > { %v1128_v52 = vsel %vm1127_vm6, %v2017_v43, %v1124_v50 }
 0x316   : > { %v1133_v53 = vsel %vm1130_vm7, %v1132_v51, %v1128_v52  ;;  %v1146_v5 = vor.u32 1.1754944e-38, %v1145_v62  ;;  %vm1144_vm12 = vcmp.eq.f32.partialorder %v1143_v0, 8.507059e+37 }
 0x317   : > { %v1176_v54 = vmul.f32 %v2009_v21, %v1133_v53  ;;  %v1878_v53 = vld [vmem:[%s2421_s23 + $0x8] sm:$0xff] }
 0x319   : > { %v1180_v55 = vpack.c.bf16 %v1176_v54, %v1176_v54  ;;  %v1877_v54 = vld [vmem:[%s2421_s23] sm:$0xff] }
 0x31a   : > { %v2019_v56 = vpop.eup %2018 }
 0x31b   : > { %v1135_v58 = vmul.f32 %v2019_v56, %v1113_v49  ;;  %1185 = vst.msk [vmem:[%s2464_s3] sm:$0xf] %vm1184_vm8, %v1180_v55  ;;  %v1193_v59 = vsel %vm958_vm3, %v1180_v55, 0  ;;  %vm1140_vm9 = vweird.f32 %v2019_v56  ;;  %v940_v49 = vpack.c.bf16 %v927_v45, %v927_v45  ;;  %v2005_v45 = vld [vmem:[%s737_s5] ss:$0 sm:$0xff]  ;;  %s1863_s5 = sshll.u32 %s2164_s24, 2 }
 0x31c   : > { %1202 = vmatpush.bf16.xpose.msrb.mxu2 %v1193_v59  ;;  %vm1141_vm11 = vmor %vm1139_vm10, %vm1140_vm9  ;;  %v2001_v59 = vld [vmem:[%s2783_s22] ss:$0 sm:$0xff]  ;;  %vm1434_vm10 = vcmask 523264   ;;  %s1516_s11 = sadd.s32 %s1863_s5, %s1862_s21 }
 0x31d   : > { %v1136_v61 = vsub.f32 1.0, %v1135_v58  ;;  %s1865_s9 = sshll.u32 %s1516_s11, 2 }
 0x31e   : > { %s1518_s22 = scalar_lea.hbm %s2793_s20, %s1865_s9 }
 0x31f   : > { %v1137_v63 = vmul.f32 %v2019_v56, %v1136_v61  ;;  %s1521_s25 = sshll.u32 %s1518_s22, 4  ;;  %s1522_s25 = int_to_ptr.hbm [resolvable:$true] %s1521_s25 }
 0x320   : > { %s2044_s23 = sshra.s32 %s1522_s25, 4  ;;  %s2045_s23 = int_to_ptr.hbm [resolvable:$true] %s2044_s23 }
 0x321   : > { %v1138_v4 = vadd.f32 %v2019_v56, %v1137_v63  ;;  %s2046_s16 = scalar_lea.hbm %s2045_s23, 16  ;;  %p2051_p11 = scmp.lt.s32.totalorder %s2045_s23, %s2794_s12 }
 0x322   : > { %p2047_p8 = scmp.ne.s32.totalorder %s2045_s23, %s2046_s16 }
 0x323   : > { %1821 = vmatmul.msk.bf16.vlgmr.msrb.gmra.mxu2 %vm958_vm3, %v937_v3  ;;  %v1142_v7 = vsel %vm1141_vm11, %v2019_v56, %v1138_v4  ;;  %v2183_v3 = vmov 32.0  }
 0x324   : > { %v1147_v8 = vsel %vm1144_vm12, %v1146_v5, %v1142_v7  ;;  %p2048_p9 = pnand %p2047_p8, %p2366_p12 }
 0x325   : > { %v1177_v9 = vmul.f32 %v2515_v26, %v1147_v8 }
 0x326   : > { %v1116_v10 = vpop.xlane.xlu1 %1115  ;;  %p2049_p10 = pneg %p2048_p9 }
 0x327   : > { %2020 = vrcp.f32 %v1116_v10  ;;  %v1181_v11 = vpack.c.bf16 %v1177_v9, %v1177_v9  ;;  %v1159_v20 = vand.u32 2147483648, %v1116_v10  ;;  %v1157_v22 = vand.u32 2147483647, %v1116_v10 }
 0x328   : > { %vm1153_vm14 = vweird.f32 %v1116_v10 }
 0x329   : > { %1186 = vst.msk [vmem:[%s2464_s3 + $0x4] sm:$0xf] %vm1184_vm8, %v1181_v11  ;;  %v1212_v13 = vsel %vm958_vm3, %v1181_v11, 0  ;;  %v1160_v25 = vor.u32 1.1754944e-38, %v1159_v20  ;;  %vm1158_vm0 = vcmp.eq.f32.partialorder %v1157_v22, 8.507059e+37  ;;  %v1883_v20 = vld [vmem:[%s2452_s6 + $0x10] sm:$0xff] }
 0x32a   : > { %1221 = vmatpush.bf16.xpose.msra.mxu3 %v1212_v13 }
 0x32d   : > { %v2021_v15 = vpop.eup %2020 }
 0x32e   : > { %v1149_v16 = vmul.f32 %v2021_v15, %v1116_v10  ;;  %v1119_v17 = vpop.xlane.xlu1 %1118  ;;  %vm1154_vm13 = vweird.f32 %v2021_v15 }
 0x32f   : > { %2022 = vrcp.f32 %v1119_v17  ;;  %vm1155_vm15 = vmor %vm1153_vm14, %vm1154_vm13  ;;  %v1173_v31 = vand.u32 2147483648, %v1119_v17  ;;  %v1171_v33 = vand.u32 2147483647, %v1119_v17  ;;  %vm1167_vm4 = vweird.f32 %v1119_v17 }
 0x330   : > { %v1150_v19 = vsub.f32 1.0, %v1149_v16  ;;  %2024 = vrcp.f32 %v2183_v3  ;;  %v1879_v16 = vld [vmem:[%s2438_s17] sm:$0xff] }
 0x331   : > { %1822 = vmatmul.msk.bf16.vlgmr.msra.gmra.mxu3 %vm958_vm3, %v938_v18  ;;  %v1174_v39 = vor.u32 1.1754944e-38, %v1173_v31  ;;  %vm1172_vm6 = vcmp.eq.f32.partialorder %v1171_v33, 8.507059e+37 }
 0x332   : > { %v1151_v21 = vmul.f32 %v2021_v15, %v1150_v19  ;;  %1312 = vmatpush.bf16.msrb.mxu3 %v1878_v53 }
 0x334   : > { %v1152_v23 = vadd.f32 %v2021_v15, %v1151_v21 }
 0x335   : > { %v2023_v24 = vpop.eup %2022 }
 0x336   : > { %v1163_v26 = vmul.f32 %v2023_v24, %v1119_v17  ;;  %v1156_v27 = vsel %vm1155_vm15, %v2021_v15, %v1152_v23  ;;  %vm1168_vm2 = vweird.f32 %v2023_v24  ;;  %1313 = vmatpush.bf16.msrb.mxu3 %v1877_v54  ;;  %v2025_v4 = vpop.eup %2024  ;;  %v1880_v15 = vld [vmem:[%s2438_s17 + $0x8] sm:$0xff]  ;;  %v1884_v17 = vld [vmem:[%s2452_s6 + $0x18] sm:$0xff]  ;;  %s2050_s17 = scalar_lea.hbm %s2794_s12, 64 }
 0x337   : > { %v1161_v28 = vsel %vm1158_vm0, %v1160_v25, %v1156_v27  ;;  %vm1169_vm5 = vmor %vm1167_vm4, %vm1168_vm2  ;;  %v1324_v5 = vmul.f32 32.0, %v2025_v4  ;;  %p2052_p0 = scmp.lt.s32.totalorder %s2050_s17, %s2046_s16 }
 0x338   : > { %v1164_v29 = vsub.f32 1.0, %v1163_v26  ;;  %v1178_v30 = vmul.f32 %v2519_v34, %v1161_v28  ;;  %v2002_v28 = vld [vmem:[%s2785_s15] ss:$0 sm:$0xff] }
 0x339   : > { %v1325_v7 = vsub.f32 1.0, %v1324_v5  ;;  %p2053_p1 = por %p2052_p0, %p2051_p11 }
 0x33a   : > { %v1165_v32 = vmul.f32 %v2023_v24, %v1164_v29  ;;  %v1182_v35 = vpack.c.bf16 %v1178_v30, %v1178_v30  ;;  %v2003_v30 = vld [vmem:[%s2787_s28] ss:$0 sm:$0xff] }
 0x33b   : > { %v1326_v8 = vmul.f32 %v2025_v4, %v1325_v7  ;;  %p2054_p4 = pnand %p2053_p1, %p2049_p10 }
 0x33c   : > { %v1166_v37 = vadd.f32 %v2023_v24, %v1165_v32  ;;  %1187 = vst.msk [vmem:[%s2464_s3 + $0x8] sm:$0xf] %vm1184_vm8, %v1182_v35  ;;  %v1231_v38 = vsel %vm958_vm3, %v1182_v35, 0 }
 0x33d   : > { %1240 = vmatpush.bf16.xpose.msra.mxu1 %v1231_v38  ;;  %v1327_v9 = vadd.f32 %v2025_v4, %v1326_v8  ;;  %v1881_v38 = vld [vmem:[%s2452_s6] sm:$0xff] }
 0x33e   : > { %v1170_v40 = vsel %vm1169_vm5, %v2023_v24, %v1166_v37  ;;  %v1882_v37 = vld [vmem:[%s2452_s6 + $0x8] sm:$0xff] }
 0x33f   : > { %v1175_v42 = vsel %vm1172_vm6, %v1174_v39, %v1170_v40  ;;  %v2004_v39 = vld [vmem:[%s729_s4] ss:$0 sm:$0xff]  ;;  %s2791_s4 = sld [smem:[#allocation9_spill]] }
 0x340   : > { %v1179_v34 = vmul.f32 %v2523_v36, %v1175_v42 }
 0x342   : > { %v1183_v43 = vpack.c.bf16 %v1179_v34, %v1179_v34 }
 0x344   : > { %1188 = vst.msk [vmem:[%s2464_s3 + $0xc] sm:$0xf] %vm1184_vm8, %v1183_v43  ;;  %v1250_v44 = vsel %vm958_vm3, %v1183_v43, 0 }
 0x345   : > { %1259 = vmatpush.bf16.xpose.msra.mxu2 %v1250_v44  ;;  %1389 = vmatpush.bf16.msrb.mxu1 %v1880_v15  ;;  %s2795_s15 = sand.u32 1, %s2791_s4  }
 0x346   : > { %v831_v46 = vpop.permute.xlu1 %830  ;;  %s1491_s30 = scalar_lea.sflag [#allocation5], %s2795_s15 }
 0x347   : > { %v925_v47 = vadd.f32 %v2504_v2, %v831_v46 }
 0x349   : > { %v939_v48 = vpack.c.bf16 %v925_v47, %v925_v47  ;;  %1390 = vmatpush.bf16.msrb.mxu1 %v1879_v16 }
 0x34b   : > { %1823 = vmatmul.msk.bf16.vlgmr.msra.gmra.mxu1 %vm958_vm3, %v939_v48 }
 0x34c   : > { %1824 = vmatmul.msk.bf16.vlgmr.msra.gmra.mxu2 %vm958_vm3, %v940_v49  ;;  %vm1328_vm3 = vweird.f32 %v2025_v4 }
 0x34d   : > { %v2562_v10 = vsel %vm1328_vm3, %v2025_v4, %v1327_v9  ;;  %1442 = vmatpush.bf16.msrb.mxu2 %v1884_v17 }
 0x351   : > { %1443 = vmatpush.bf16.msrb.mxu2 %v1883_v20 }
 0x355   : > { %1444 = vmatpush.bf16.msrb.mxu2 %v1882_v37 }
 0x359   : > { %1445 = vmatpush.bf16.msrb.mxu2 %v1881_v38 }
 0x3a6   : > { %v1204_v36 = vpop.f32.mrf.mxu2 }
 0x3ae   : > { %v1206_v50 = vpop.f32.mrf.mxu2 }
 0x3b4   : > { %v1223_v51 = vpop.f32.mrf.mxu3 }
 0x3b5   : > { %v1265_v52 = vpack.c.bf16 %v1223_v51, %v1204_v36 }
 0x3b7   : > { %1275 = vxpose.xlu1.c.b16.start [1/2] (short) (narrow) %v1265_v52, 16 }
 0x3bc   : > { %v1225_v55 = vpop.f32.mrf.mxu3 }
 0x3c8   : > { %v1242_v6 = vpop.f32.mrf.mxu1 }
 0x3cf   : > { %v1261_v41 = vpop.f32.mrf.mxu2 }
 0x3d0   : > { %v1266_v2 = vpack.c.bf16 %v1261_v41, %v1242_v6  ;;  %v1244_v56 = vpop.f32.mrf.mxu1 }
 0x3d2   : > { %1276 = vxpose.xlu1.c.b16.end [2/2] (short) (narrow) %v1266_v2, 16 }
 0x3d7   : > { %v1263_v57 = vpop.f32.mrf.mxu2 }
 0x46e   : > { %v1283_v58 = vpop.trf.xlu1 }
 0x46f   : > { %1833 = vmatmul.msk.bf16.vlgmr.msrb.gmra.mxu3 %vm868_vm1, %v1283_v58 }
 0x4f2   : > { %v1315_v60 = vpop.f32.mrf.mxu3 }
 0x4f3   : > { %v1316_v61 = vadd.f32 %v2001_v59, %v1315_v60 }
 0x4f5   : > { %v1319_v62 = vadd.f32 %v1316_v61, %v2469_v1 }
 0x4f7   : > { %v1320_v63 = vsel %vm868_vm1, %v1319_v62, 0.0 }
 0x4f8   : > { %1321 = vadd.xlane.f32.xlu2 %v1320_v63 }
 0x4fa   : > { %v1317_v0 = vpop.f32.mrf.mxu3 }
 0x56b   : > { %v1322_v11 = vpop.xlane.xlu2 %1321 }
 0x56c   : > { %v1330_v1 = vmul.f32 %v2562_v10, %v1322_v11 }
 0x56e   : > { %v1331_v12 = vsub.f32 %v1319_v62, %v1330_v1 }
 0x570   : > { %v1332_v13 = vmul.f32 %v1331_v12, %v1331_v12 }
 0x572   : > { %v1333_v14 = vsel %vm868_vm1, %v1332_v13, 0.0 }
 0x573   : > { %1334 = vadd.xlane.f32.xlu0 %v1333_v14 }
 0x5e6   : > { %v1335_v18 = vpop.xlane.xlu0 %1334 }
 0x5e7   : > { %v1336_v19 = vmul.f32 %v1335_v18, %v2562_v10 }
 0x5e9   : > { %v1337_v21 = vadd.f32 1e-05, %v1336_v19 }
 0x5eb   : > { %2026 = vrsqrt.f32 %v1337_v21  ;;  %vm1344_vm8 = vweird.f32 %v1337_v21 }
 0x5f1   : > { %v2027_v22 = vpop.eup %2026 }
 0x5f2   : > { %v1339_v23 = vmul.f32 %v2027_v22, %v1337_v21  ;;  %vm1345_vm7 = vweird.f32 %v2027_v22 }
 0x5f3   : > { %vm1346_vm9 = vmor %vm1344_vm8, %vm1345_vm7 }
 0x5f4   : > { %v1340_v24 = vmul.f32 %v2027_v22, %v1339_v23 }
 0x5f6   : > { %v1341_v25 = vmul.f32 0.5, %v1340_v24 }
 0x5f8   : > { %v1342_v26 = vsub.f32 1.5, %v1341_v25 }
 0x5fa   : > { %v1343_v27 = vmul.f32 %v2027_v22, %v1342_v26 }
 0x5fc   : > { %v1347_v29 = vsel %vm1346_vm9, %v2027_v22, %v1343_v27 }
 0x5fd   : > { %v1348_v31 = vmul.f32 %v1347_v29, %v1331_v12 }
 0x5ff   : > { %v1353_v32 = vmul.f32 %v2002_v28, %v1348_v31 }
 0x601   : > { %v1358_v33 = vadd.f32 %v2003_v30, %v1353_v32 }
 0x603   : > { %v1359_v35 = vpack.c.bf16 %v1358_v33, %v1358_v33 }
 0x605   : > { %1842 = vmatmul.msk.bf16.vlgmr.msrb.gmra.mxu1 %vm868_vm1, %v1359_v35 }
 0x682   : > { %v1392_v40 = vpop.f32.mrf.mxu1 }
 0x683   : > { %v1393_v42 = vadd.f32 %v2004_v39, %v1392_v40 }
 0x685   : > { %v1396_v34 = vmax.f32 %v1393_v42, 0.0 }
 0x687   : > { %v1397_v43 = vpack.c.bf16 %v1396_v34, %v1396_v34 }
 0x689   : > { %1859 = vmatmul.msk.bf16.vlgmr.msrb.gmra.mxu2 %vm1434_vm10, %v1397_v43 }
 0x68a   : > { %v1394_v44 = vpop.f32.mrf.mxu1 }
 0x70c   : > { %v1447_v46 = vpop.f32.mrf.mxu2 }
 0x70d   : > { %v1448_v47 = vadd.f32 %v2005_v45, %v1447_v46 }
 0x70f   : > { %v1451_v48 = vadd.f32 %v1448_v47, %v1358_v33 }
 0x711   : > { %v1452_v49 = vsel %vm868_vm1, %v1451_v48, 0.0 }
 0x712   : > { %1453 = vadd.xlane.f32.xlu2 %v1452_v49 }
 0x714   : > { %v1449_v36 = vpop.f32.mrf.mxu2 }
 0x785   : > { %v1454_v50 = vpop.xlane.xlu2 %1453 }
 0x786   : > { %v1455_v51 = vmul.f32 %v1454_v50, %v2562_v10 }
 0x788   : > { %v1456_v52 = vsub.f32 %v1451_v48, %v1455_v51 }
 0x78a   : > { %v1457_v53 = vmul.f32 %v1456_v52, %v1456_v52 }
 0x78c   : > { %v1458_v54 = vsel %vm868_vm1, %v1457_v53, 0.0 }
 0x78d   : > { %1459 = vadd.xlane.f32.xlu0 %v1458_v54 }
 0x78e   : > { %2057 = shalt.err (!%p2054_p4)
}
 0x78f   : > { %s2184_s3 = smov 64   ;;  %s2185_s2 = smov 4   ;;  %v2006_v61 = vld [vmem:[%s740_s27] ss:$0 sm:$0xff] }
 0x790   : > { %1889 = dma.vmem_to_hbm [thread:$0]  (%p2366_p12), %s1520_s14, 256, %s1522_s25, %s1491_s30, %s2184_s3, %s2184_s3, %s2185_s2  }
 0x791   : > { %s2796_s19 = sld [smem:[#allocation12_spill]]  ;;  %v2007_v0 = vld [vmem:[%s743_s7] ss:$0 sm:$0xff]  ;;  %s1503_s14 = sshll.u32 %s2462_s0, 4  ;;  %s1504_s14 = int_to_ptr.vmem [resolvable:$true] %s1503_s14 }
 0x792   : > { %s2798_s9 = sld [smem:[#allocation40_spill]] }
 0x797   : > { %s2801_s27 = sand.u32 1, %s2796_s19  }
 0x798   : > { %s1501_s1 = scalar_lea.hbm %s2798_s9, %s1862_s21  ;;  %s1486_s10 = scalar_lea.sflag [#allocation3], %s2801_s27 }
 0x799   : > { %s1505_s15 = sshll.u32 %s1501_s1, 4  ;;  %s2078_s7 = scalar_lea.hbm %s2798_s9, 16  ;;  %s1506_s15 = int_to_ptr.hbm [resolvable:$true] %s1505_s15 }
 0x79a   : > { %s2072_s30 = sshra.s32 %s1506_s15, 4  ;;  %s2073_s30 = int_to_ptr.hbm [resolvable:$true] %s2072_s30 }
 0x79b   : > { %s2074_s21 = scalar_lea.hbm %s2073_s30, 8  ;;  %p2079_p6 = scmp.lt.s32.totalorder %s2073_s30, %s2798_s9 }
 0x79c   : > { %p2075_p12 = scmp.ne.s32.totalorder %s2073_s30, %s2074_s21  ;;  %p2080_p8 = scmp.lt.s32.totalorder %s2078_s7, %s2074_s21 }
 0x79e   : > { %p2076_p2 = pnand %p2075_p12, %p2337_p3  ;;  %p2081_p9 = por %p2080_p8, %p2079_p6 }
 0x7a0   : > { %p2077_p5 = pneg %p2076_p2 }
 0x7a2   : > { %p2082_p10 = pnand %p2081_p9, %p2077_p5 }
 0x800   : > { %v1460_v55 = vpop.xlane.xlu0 %1459 }
 0x801   : > { %v1461_v6 = vmul.f32 %v1460_v55, %v2562_v10 }
 0x803   : > { %v1462_v41 = vadd.f32 1e-05, %v1461_v6 }
 0x805   : > { %2028 = vrsqrt.f32 %v1462_v41  ;;  %vm1469_vm12 = vweird.f32 %v1462_v41 }
 0x80b   : > { %v2029_v2 = vpop.eup %2028 }
 0x80c   : > { %v1464_v56 = vmul.f32 %v2029_v2, %v1462_v41  ;;  %vm1470_vm11 = vweird.f32 %v2029_v2 }
 0x80d   : > { %vm1471_vm13 = vmor %vm1469_vm12, %vm1470_vm11 }
 0x80e   : > { %v1465_v57 = vmul.f32 %v2029_v2, %v1464_v56 }
 0x810   : > { %v1466_v58 = vmul.f32 0.5, %v1465_v57 }
 0x812   : > { %v1467_v59 = vsub.f32 1.5, %v1466_v58 }
 0x814   : > { %v1468_v60 = vmul.f32 %v2029_v2, %v1467_v59 }
 0x816   : > { %v1472_v62 = vsel %vm1471_vm13, %v2029_v2, %v1468_v60 }
 0x817   : > { %v1473_v63 = vmul.f32 %v1472_v62, %v1456_v52 }
 0x819   : > { %v1478_v3 = vmul.f32 %v2006_v61, %v1473_v63 }
 0x81b   : > { %v1483_v4 = vadd.f32 %v2007_v0, %v1478_v3 }
 0x81d   : > { %1484 = vst.msk [vmem:[%s2462_s0] sm:$0xff] %vm868_vm1, %v1483_v4 }
 0x81e   : > { %2085 = shalt.err (!%p2082_p10)
}
 0x81f   : > { %1888 = dma.vmem_to_hbm [thread:$0]  (%p2337_p3), %s1504_s14, 128, %s1506_s15, %s1486_s10  }
 0x820 PF: > { %s2802_s0 = sld [smem:[#allocation17_spill]] }
 0x821   : > { %s2803_s28 = sld [smem:[#allocation11_spill]] }
 0x826   : > { %p1899_p11 = scmp.ge.s32.totalorder %s2802_s0, 2 }
 0x827   : > { %s1536_s13 = sand.u32 1, %s2803_s28  }
 0x828   : > { %p1893_p0 = pnand %p1899_p11, %p2354_p7  ;;  %s1537_s26 = scalar_lea.sflag [#allocation3], %s1536_s13 }
 0x82a   : > { %p1894_p1 = pneg %p1893_p0 }
 0x82c   : > { %2131 = dma.done.wait (%p1894_p1), %s1537_s26, 128  }
 0x82d   : > { %2133 = vsyncadd (%p1894_p1), %s1537_s26, 4294967168  ;;  %s2805_s3 = sld [smem:[#allocation8_spill]]  ;;  %p1896_p4 = pnand %p1899_p11, %p2378_p13 }
 0x82f   : > { %p1897_p12 = pneg %p1896_p4 }
 0x833   : > { %s1546_s19 = sand.u32 1, %s2805_s3  }
 0x834   : > { %s1547_s18 = scalar_lea.sflag [#allocation5], %s1546_s19 }
 0x835   : > { %2135 = dma.done.wait (%p1897_p12), %s1547_s18, 256  }
 0x836   : > { %2137 = vsyncadd (%p1897_p12), %s1547_s18, 4294967040  ;;  %s32_s28 = sadd.s32 1, %s2802_s0   ;;  %s2807_s18 = sld [smem:[#allocation9_spill]] }
 0x837   : > { %p29_p3 = scmp.ge.s32.totalorder %s32_s28, 6   ;;  %s2808_s19 = sld [smem:[#allocation10_spill]] }
 0x838   : > { %s2809_s20 = sld [smem:[#allocation24_spill]] }
 0x839   : > { %s2810_s21 = sld [smem:[#allocation12_spill]] }
 0x83a   : > { %s2811_s22 = sld [smem:[#allocation13_spill]] }
 0x83b   : > { %s2812_s23 = sld [smem:[#allocation23_spill]]  ;;  %31 = sbr.rel (!%p29_p3) target bundleno = 26 (0x1a), region = 171 }
 0x83c   : > { %s2813_s24 = sld [smem:[#allocation15_spill]] }
 0x83d   : > { %s2814_s25 = sld [smem:[#allocation16_spill]] }
 0x83e   : > { %s2815_s26 = sld [smem:[#allocation18_spill]] }
 0x83f   : > { %s2816_s27 = sld [smem:[#allocation20_spill]] }
 0x840   :  { %1553 = vsyncpa [#allocation3], 1 }
 0x841   :  { %1555 = vsyncpa [#allocation3 + $0x1], 1 }
 0x842   :  { %1556 = vsyncpa [#allocation5], 1 }
 0x843   :  { %1558 = vsyncpa [#allocation5 + $0x1], 1 }

</bundles_post_ra>
